<compile_context>
chip_gen: v5e
topology: v5e:2x2
jax: 0.10.0
libtpu: 0.0.40
codegen_flags: <defaults>
</compile_context>

<pallas_src>
import functools

import jax
import jax.numpy as jnp
from jax.experimental import pallas as pl
from jax.experimental.pallas import tpu as pltpu


_X_BLOCK_BUDGET_BYTES = 12 * 1024 * 1024   # per input block (x2 double-buffered)
_VMEM_LIMIT_BYTES = 48 * 1024 * 1024       # <=64 MiB v7x physical, with headroom


def _sumpool_kernel(x_ref, o_ref, *, hw_total, tile_hw, mask_hw, single_hw_step):
    """Accumulate per-(batch, channel) spatial sums.

    x_ref: (tile_n, C, tile_hw) input slab.
    o_ref: (tile_n, C) f32 lane-dense output block. Its index_map ignores the
           HW grid axis, so it stays resident in VMEM across the reduction and
           we accumulate directly into it (no scratch, no finalize copy).
    """
    x = x_ref[...].astype(jnp.float32)
    if mask_hw:
        # Ragged last HW block: zero out-of-range lanes before accumulating.
        start = pl.program_id(1) * tile_hw
        col = jax.lax.broadcasted_iota(jnp.int32, x.shape, dimension=2)
        x = jnp.where(start + col < hw_total, x, 0.0)
    part = jnp.sum(x, axis=-1)  # (tile_n, C)

    if single_hw_step:
        o_ref[...] = part       # full-HW block: single shot, no init needed
    else:
        @pl.when(pl.program_id(1) == 0)
        def _():
            o_ref[...] = jnp.zeros_like(o_ref)

        o_ref[...] += part


def _select_tiles(n, c, hw, itemsize, budget):
    """Prefer full-HW blocks (contiguous per-batch DMA, no reduction axis);
    shrink tile_n first, only tile HW when even the smallest legal batch tile
    with full HW exceeds the budget."""
    slab = c * hw * itemsize                 # one batch's full (C, HW) slab
    min_tn = n if n < 8 else 8               # smallest legal batch tile
    if min_tn * slab <= budget:
        if n < 8:
            return n, hw
        fit = (budget // slab // 8) * 8      # largest mult-of-8 batch tile in budget
        return int(min(fit, (n // 8) * 8)), hw
    # Full HW does not fit even with the minimal batch tile -> tile the HW axis.
    tile_n = min_tn
    cap = budget // (tile_n * c * itemsize)  # HW columns per block within budget
    tile_hw = max(128, (cap // 128) * 128)   # lane-width multiple
    tile_hw = min(tile_hw, hw)
    return tile_n, int(tile_hw)


def spatial_layer_forward(x, conv_w, *, block_budget_bytes=_X_BLOCK_BUDGET_BYTES):
    """ECA-style spatial_layer forward.

    x:      (N, C, H, W)
    conv_w: (k,) Conv1d weight (out_ch=1, in_ch=1 squeezed), k odd
    returns (N, C, 1, 1) attention map (sigmoid output), dtype of x
    """
    N, C, H, W = x.shape
    HW = H * W
    xf = x.reshape(N, C, HW)

    tile_n, tile_hw = _select_tiles(N, C, HW, xf.dtype.itemsize, block_budget_bytes)
    grid_n = pl.cdiv(N, tile_n)
    grid_hw = pl.cdiv(HW, tile_hw)
    mask_hw = (HW % tile_hw) != 0
    single_hw_step = grid_hw == 1

    kernel = functools.partial(
        _sumpool_kernel,
        hw_total=HW,
        tile_hw=tile_hw,
        mask_hw=mask_hw,
        single_hw_step=single_hw_step,
    )

    pooled_sum = pl.pallas_call(
        kernel,
        out_shape=jax.ShapeDtypeStruct((N, C), jnp.float32),
        grid_spec=pltpu.PrefetchScalarGridSpec(
            num_scalar_prefetch=0,
            grid=(grid_n, grid_hw),
            in_specs=[
                pl.BlockSpec((tile_n, C, tile_hw), lambda n, h: (n, 0, h)),
            ],
            out_specs=pl.BlockSpec((tile_n, C), lambda n, h: (n, 0)),
        ),
        compiler_params=pltpu.CompilerParams(
            dimension_semantics=("parallel", "arbitrary"),
            vmem_limit_bytes=_VMEM_LIMIT_BYTES,
        ),
    )(xf)

    # Tiny epilogue, O(k*N*C): Conv1d over channels via k shifted adds with the
    # 1/HW pooling scale folded into the weights, then sigmoid.
    k = conv_w.shape[0]
    pad = (k - 1) // 2
    w = conv_w.astype(jnp.float32) / float(HW)
    mp = jnp.pad(pooled_sum, ((0, 0), (pad, pad)))
    y = w[0] * mp[:, 0:C]
    for t in range(1, k):
        y = y + w[t] * mp[:, t:t + C]
    y = jax.nn.sigmoid(y).astype(x.dtype)
    return y.reshape(N, C, 1, 1)


def _reference(x, conv_w):
    # pure-JAX reference for correctness check
    m = jnp.mean(x.astype(jnp.float32), axis=(2, 3))  # (N, C)
    k = conv_w.shape[0]
    pad = (k - 1) // 2
    mp = jnp.pad(m, ((0, 0), (pad, pad)))
    y = jnp.zeros_like(m)
    for t in range(k):
        y = y + conv_w[t] * mp[:, t:t + m.shape[1]]
    return jax.nn.sigmoid(y)[:, :, None, None].astype(x.dtype)


if __name__ == "__main__":
    key = jax.random.PRNGKey(0)
    kx, kw, kx2, kx3 = jax.random.split(key, 4)

    # deterministic Conv1d(1, 1, 3, bias=False) weight
    conv_w = jax.random.normal(kw, (3,), dtype=jnp.float32) * 0.5

    # 1) Required small shape: full-HW single-step path.
    x1 = jax.random.normal(kx, (2, 4, 16, 16), dtype=jnp.float32)
    out1 = jax.block_until_ready(spatial_layer_forward(x1, conv_w))
    assert out1.shape == (2, 4, 1, 1)
    assert jnp.allclose(out1, _reference(x1, conv_w), atol=1e-5, rtol=1e-5)

    # 2) Force the HW-tiled path with a ragged, masked last block
    #    (HW = 225, tile_hw = 128, accumulation across two HW steps).
    x2 = jax.random.normal(kx2, (2, 4, 15, 15), dtype=jnp.float32)
    out2 = jax.block_until_ready(
        spatial_layer_forward(x2, conv_w, block_budget_bytes=4096))
    assert jnp.allclose(out2, _reference(x2, conv_w), atol=1e-5, rtol=1e-5)

    # 3) Ragged batch tail (N=10, tile_n=8) with full-HW blocks.
    x3 = jax.random.normal(kx3, (10, 4, 8, 8), dtype=jnp.float32)
    out3 = jax.block_until_ready(spatial_layer_forward(x3, conv_w))
    assert jnp.allclose(out3, _reference(x3, conv_w), atol=1e-5, rtol=1e-5)

    print("KERNEL_OK")
</pallas_src>

<mosaic_0001>
module attributes {stable_mosaic.version = 11 : i64} {
  func.func @_sumpool_kernel(%arg0: i32, %arg1: i32, %arg2: memref<2x4x256xf32, #tpu.memory_space<vmem>>, %arg3: memref<2x4xf32, #tpu.memory_space<vmem>>) attributes {dimension_semantics = [#tpu.dimension_semantics<parallel>, #tpu.dimension_semantics<arbitrary>], iteration_bounds = array<i64: 1, 1>, scalar_prefetch = 0 : i64, scratch_operands = 0 : i64, tpu.core_type = #tpu.core_type<tc>, window_params = [{transform_indices = @transform_0, window_bounds = array<i64: 2, 4, 256>}, {transform_indices = @transform_1, window_bounds = array<i64: 2, 4>}]} {
    %c0 = arith.constant 0 : index
    %c0_0 = arith.constant 0 : index
    %c0_1 = arith.constant 0 : index
    %0 = vector.load %arg2[%c0, %c0_0, %c0_1] : memref<2x4x256xf32, #tpu.memory_space<vmem>>, vector<2x4x256xf32>
    %cst = arith.constant dense<0.000000e+00> : vector<2x4xf32>
    %1 = vector.multi_reduction <add>, %0, %cst [2] : vector<2x4x256xf32> to vector<2x4xf32>
    %c0_2 = arith.constant 0 : index
    %c0_3 = arith.constant 0 : index
    %2 = vector.load %arg3[%c0_2, %c0_3] : memref<2x4xf32, #tpu.memory_space<vmem>>, vector<2x4xf32>
    tpu.vector_store %arg3[%c0_2, %c0_3], %1 {strides = array<i32>} : memref<2x4xf32, #tpu.memory_space<vmem>>, vector<2x4xf32>,
    return
  }
  func.func @transform_0(%arg0: i32, %arg1: i32) -> (i32, i32, i32) {
    %c0_i32 = arith.constant 0 : i32
    %c0_i32_0 = arith.constant 0 : i32
    return %arg0, %c0_i32, %arg1 : i32, i32, i32
  }
  func.func @transform_1(%arg0: i32, %arg1: i32) -> (i32, i32) {
    %c0_i32 = arith.constant 0 : i32
    %c0_i32_0 = arith.constant 0 : i32
    return %arg0, %c0_i32 : i32, i32
  }
}

</mosaic_0001>

<bundles_post_ra>
// kernel: tpu_custom_call.1
= control target key start
LH: loop header
LB: loop body
LE: loop exit
PB: predicated region body
PF: predicated region fallthrough
CT: control target
= control target key end

     0   :  { %6 = vsyncpa [#allocation3], 0  ;;  %s155_s0 = inlined_call_operand.hbm [shape: f32[2,4,256], index: 0, kind: input, shape index: {}]   ;;  %s156_s1 = inlined_call_operand.hbm [shape: f32[2,4], index: 1, kind: output, shape index: {}]  }
   0x1   :  { %7 = vsyncpa [#allocation4], 0  ;;  %s12_s8 = sshll.u32 %s155_s0, 4  ;;  %s135_s9 = smov [#allocation2]   ;;  %s13_s8 = int_to_ptr.hbm [resolvable:$true] %s12_s8 }
   0x2   :  { %s14_s10 = sshll.u32 %s135_s9, 4  ;;  %s136_s11 = smov 128   ;;  %s15_s10 = int_to_ptr.vmem [resolvable:$true] %s14_s10 }
   0x3   :  { %s137_s12 = smov 8  }
   0x4   :  { %20 = dma.hbm_to_vmem [thread:$0]  %s13_s8, 256, %s15_s10, [#allocation3], %s136_s11, %s136_s11, %s137_s12  }
   0x5   :  { %131 = dma.done.wait [#allocation3], 256  }
   0x6   :  { %132 = vsyncadd [#allocation3], 4294967040  ;;  %v25_v0 = vld [vmem:[#allocation2] sm:$0xff]  ;;  %v26_v1 = vld [vmem:[#allocation2 + $0x8] sm:$0xff]  ;;  %vm40_vm0 = vcmask 1043456   ;;  %v53_v13 = vlaneseq  ;;  %s138_s0 = smov [#allocation5]  }
   0x7   :  { %29 = vst [vmem:[#allocation1] ss:$2 sm:$0xff] %v25_v0  ;;  %s67_s13 = sshll.u32 %s138_s0, 4  ;;  %s69_s16 = sshll.u32 %s156_s1, 4  ;;  %vm57_vm1 = vcmask 1041409   ;;  %vm60_vm2 = vcmask 25600   ;;  %s68_s13 = int_to_ptr.vmem [resolvable:$true] %s67_s13  ;;  %s70_s16 = int_to_ptr.hbm [resolvable:$true] %s69_s16 }
   0x8   :  { %33 = vst [vmem:[#allocation1 + $0x10] ss:$2 sm:$0xff] %v26_v1  ;;  %v54_v14 = vand.u32 127, %v53_v13 }
   0xe   :  { %v30_v2 = vld.sshfl [vmem:[#allocation1] sm:$0xff pattern:$0x75316420]  ;;  %v31_v3 = vld.sshfl [vmem:[#allocation1 + $0x8] sm:$0xff pattern:$0x75316420] }
   0xf   :  { %v41_v4 = vsel %vm40_vm0, %v30_v2, 0.0  ;;  %v42_v5 = vsel %vm40_vm0, %v31_v3, 0.0  ;;  %v34_v7 = vld.sshfl [vmem:[#allocation1 + $0x10] sm:$0xff pattern:$0x75316420] }
  0x10   :  { %v43_v6 = vadd.f32 %v42_v5, %v41_v4  ;;  %v35_v8 = vld.sshfl [vmem:[#allocation1 + $0x18] sm:$0xff pattern:$0x75316420]  ;;  %v46_v9 = vsel %vm40_vm0, %v34_v7, 0.0 }
  0x11   :  { %v47_v10 = vsel %vm40_vm0, %v35_v8, 0.0 }
  0x12   :  { %44 = vadd.xlane.f32.xlu0 %v43_v6  ;;  %v48_v11 = vadd.f32 %v47_v10, %v46_v9 }
  0x1a   :  { %49 = vadd.xlane.f32.xlu0 %v48_v11 }
  0x85   :  { %v45_v12 = vpop.xlane.xlu0 %44 }
  0x86   :  { %v55_v16 = vperm.slane %v45_v12, %v54_v14 }
  0x8d   :  { %v50_v15 = vpop.xlane.xlu0 %49 }
  0x8e   :  { %v56_v17 = vperm.slane %v50_v15, %v54_v14 }
  0x90   :  { %v58_v18 = vsel %vm57_vm1, %v56_v17, %v55_v16 }
  0x91   :  { %61 = vst.msk [vmem:[#allocation5] sm:$0x3] %vm60_vm2, %v58_v18 }
  0x92   :  { %72 = dma.vmem_to_hbm [thread:$0]  %s68_s13, 32, %s70_s16, [#allocation4]  }
  0x93   :  { %133 = dma.done.wait [#allocation4], 32  }
  0x94   :  { %134 = vsyncadd [#allocation4], 4294967264 }
  0x95   :  { %77 = vsyncpa [#allocation3], 1 }
  0x96   :  { %78 = vsyncpa [#allocation4], 1 }

</bundles_post_ra>
